<compile_context>
chip_gen: v7x
topology: tpu7x:2x2x1
jax: 0.10.0
libtpu: 0.0.40
codegen_flags: <defaults>
</compile_context>

<pallas_src>
import functools

import jax
import jax.numpy as jnp
from jax.experimental import pallas as pl
from jax.experimental.pallas import tpu as pltpu


LANE = 128                       # lane (last-dim) tile multiple
_MIN_TB = 128                    # minimum / fallback batch tile
_TB_CANDIDATES = (512, 256, 128) # MXU-aligned batch tiles (static -> few recompiles)
_HEADROOM = 8 * 1024 * 1024      # VMEM headroom for Mosaic internals


def _round_up(x, m):
    return ((x + m - 1) // m) * m


def _pad_to(x, shape):
    pads = [(0, s - d) for d, s in zip(x.shape, shape)]
    if all(p == (0, 0) for p in pads):
        return x
    return jnp.pad(x, pads)


def _vmem_capacity_bytes():
    try:
        return int(pltpu.get_tpu_info().vmem_capacity_bytes)
    except Exception:
        return 64 * 1024 * 1024   # conservative: v7x per-TensorCore size


# ----------------------------------------------------------------------------
# Deterministic "hnHash": maps each virtual weight position (i, j) of the
# (fan_out, fan_in) matrix to one of K true parameters.
# TODO(synk): exact hnHash (xxhash-based) from HashNet-pytorch/hashing.py not
#             available; deterministic stand-in hash with identical shape
#             semantics (indices in [0, K)).
# ----------------------------------------------------------------------------
def hash_indices(fan_out, fan_in, K):
    i = jnp.arange(fan_out, dtype=jnp.uint32)[:, None]
    j = jnp.arange(fan_in, dtype=jnp.uint32)[None, :]
    h = (i * jnp.uint32(2654435761) + j * jnp.uint32(40503)
         + jnp.uint32(97)) & jnp.uint32(0x7FFFFFFF)
    return (h % jnp.uint32(K)).astype(jnp.int32)  # (fan_out, fan_in)


def expand_weight(W_true, fan_out, fan_in, K):
    """w[i, j] = W_true[hash(i, j)] -> (fan_out, fan_in)."""
    return W_true[hash_indices(fan_out, fan_in, K)]


# ----------------------------------------------------------------------------
# Pallas kernel: fused 2-layer hashed MLP on one (batch tile, hidden chunk).
#   acc += relu(x @ w1t[:, chunk] + b1[chunk]) @ w2t[chunk, :]
#   o    = acc + b2                              (on the last hidden chunk)
# x arrives f32 and is cast to the (bf16) weight dtype in-kernel; accumulation
# and bias/ReLU are f32.
# ----------------------------------------------------------------------------
def hashnet2_kernel(x_ref, w1t_ref, b1_ref, w2t_ref, b2_ref, o_ref, acc_ref):
    k = pl.program_id(1)

    @pl.when(k == 0)
    def _():
        acc_ref[...] = jnp.zeros_like(acc_ref)

    x = x_ref[...].astype(w1t_ref.dtype)                       # (TB, IN) bf16
    h = jnp.dot(x, w1t_ref[...],
                preferred_element_type=jnp.float32)            # (TB, TH) f32 (MXU)
    h = jnp.maximum(h + b1_ref[...], 0.0)                      # bias + ReLU (VPU, f32)
    acc_ref[...] += jnp.dot(h.astype(w2t_ref.dtype), w2t_ref[...],
                            preferred_element_type=jnp.float32)  # (TB, OUT) f32

    @pl.when(k == pl.num_programs(1) - 1)
    def _():
        o_ref[...] = (acc_ref[...] + b2_ref[...]).astype(o_ref.dtype)


def _vmem_budget(tb, in_pad, th, out_pad, n_hid, wsize):
    """Bytes of VMEM the pipeline + kernel intermediates need (plus headroom)."""
    wbuf = 1 if n_hid == 1 else 2          # single-buffered when weights are resident
    b = 0
    b += 2 * tb * in_pad * 4               # x tiles (double-buffered, f32)
    b += wbuf * in_pad * th * wsize        # w1t chunk(s)
    b += wbuf * 8 * th * 4                 # b1 chunk(s)  (sublane-padded to 8 rows)
    b += wbuf * th * out_pad * wsize       # w2t chunk(s)
    b += 1 * 8 * out_pad * 4               # b2 (single-buffered)
    b += 2 * tb * out_pad * 4              # output tiles (double-buffered, f32)
    b += tb * out_pad * 4                  # f32 accumulator scratch
    b += tb * in_pad * wsize               # in-kernel: x cast
    b += tb * th * 4 + tb * th * wsize     # in-kernel: h (f32) + h cast
    return b + _HEADROOM


@functools.partial(
    jax.jit, static_argnames=("tb", "th", "out_size", "vmem_limit"))
def _hashnet2_forward(x, w1t, b1_row, w2t, b2_row, *, tb, th, out_size,
                      vmem_limit):
    """x: (B, input_size) f32; w1t: (in_pad, hid_pad); w2t: (hid_pad, out_pad)."""
    B = x.shape[0]
    in_pad, hid_pad = w1t.shape
    out_pad = w2t.shape[1]
    b_pad = _round_up(B, tb)
    n_hid = hid_pad // th
    grid = (b_pad // tb, n_hid)

    # Zero-padding keeps results exact; skipped entirely when already aligned.
    x_pad = _pad_to(x.astype(jnp.float32), (b_pad, in_pad))

    vmem = pltpu.MemorySpace.VMEM

    def _spec(shape, index_map, mode=None):
        if mode is None:
            return pl.BlockSpec(shape, index_map, memory_space=vmem)
        return pl.BlockSpec(shape, index_map, memory_space=vmem,
                            pipeline_mode=mode)

    # Single-buffer operands whose block index never changes over the grid.
    resident = pl.Buffered(1)
    w_mode = resident if n_hid == 1 else None   # stream (double-buffer) otherwise

    wsize = jnp.dtype(w1t.dtype).itemsize
    cost = pl.CostEstimate(
        flops=2 * b_pad * (in_pad * hid_pad + hid_pad * out_pad),
        transcendentals=0,
        bytes_accessed=(b_pad * in_pad * 4
                        + (in_pad * hid_pad + hid_pad * out_pad) * wsize
                        + (hid_pad + out_pad) * 4
                        + b_pad * out_pad * 4),
    )

    out_full = pl.pallas_call(
        hashnet2_kernel,
        out_shape=jax.ShapeDtypeStruct((b_pad, out_pad), jnp.float32),
        grid=grid,
        in_specs=[
            _spec((tb, in_pad), lambda i, k: (i, 0)),
            _spec((in_pad, th), lambda i, k: (0, k), w_mode),
            _spec((1, th), lambda i, k: (0, k), w_mode),
            _spec((th, out_pad), lambda i, k: (k, 0), w_mode),
            _spec((1, out_pad), lambda i, k: (0, 0), resident),
        ],
        out_specs=_spec((tb, out_pad), lambda i, k: (i, 0)),
        scratch_shapes=[pltpu.VMEM((tb, out_pad), jnp.float32)],
        compiler_params=pltpu.CompilerParams(
            dimension_semantics=("parallel", "arbitrary"),
            vmem_limit_bytes=vmem_limit,
        ),
        cost_estimate=cost,
    )(x_pad, w1t, b1_row, w2t, b2_row)

    return out_full[:B, :out_size]


# ----------------------------------------------------------------------------
# Module-equivalent wrapper: parameter init + hash expansion + padding (glue)
# around the Pallas kernel.
# ----------------------------------------------------------------------------
class HashNet2LayerPallas:

    def __init__(self, input_size, hidden_size, output_size, k1, k2, key,
                 param_dtype=jnp.bfloat16):
        k_w1, k_b1, k_w2, k_b2 = jax.random.split(key, 4)

        self.input_size = input_size
        self.hidden_size = hidden_size
        self.output_size = output_size
        self._wsize = jnp.dtype(param_dtype).itemsize

        # newHashedLayer(fan_in, fan_out, K):
        #   W ~ randn(K)/d, bias ~ randn(fan_out)/d, d = fan_out*fan_in/K
        d1 = hidden_size * input_size / k1
        self.W1 = jax.random.normal(k_w1, (k1,), jnp.float32) / d1
        self.b1 = jax.random.normal(k_b1, (hidden_size,), jnp.float32) / d1

        d2 = output_size * hidden_size / k2
        self.W2 = jax.random.normal(k_w2, (k2,), jnp.float32) / d2
        self.b2 = jax.random.normal(k_b2, (output_size,), jnp.float32) / d2

        # Hash-expand to virtual (fan_out, fan_in) matrices, pre-transpose so
        # the kernel does plain (B, in) @ (in, out) MXU matmuls.
        w1 = expand_weight(self.W1, hidden_size, input_size, k1)   # (hidden, in)
        w2 = expand_weight(self.W2, output_size, hidden_size, k2)  # (out, hidden)

        # Lane-dense padded shapes (zero padding keeps results exact: padded
        # input / hidden columns and padded w2 rows contribute exactly zero).
        self.in_pad = _round_up(input_size, LANE)
        self.hid_pad = _round_up(hidden_size, LANE)
        self.out_pad = _round_up(output_size, LANE)

        # NOTE: x / w1 / w2 / layer-1 activation are rounded to bf16 by
        # default (f32 MXU accumulation).  Pass param_dtype=jnp.float32 for
        # strict-precision parity with the f32 PyTorch forward.
        w1t = _pad_to(jnp.transpose(w1), (self.in_pad, self.hid_pad))
        w2t = _pad_to(jnp.transpose(w2), (self.hid_pad, self.out_pad))
        self.w1t = w1t.astype(param_dtype)                              # (in_p, hid_p)
        self.w2t = w2t.astype(param_dtype)                              # (hid_p, out_p)
        self.b1_row = _pad_to(self.b1[None, :], (1, self.hid_pad)).astype(jnp.float32)
        self.b2_row = _pad_to(self.b2[None, :], (1, self.out_pad)).astype(jnp.float32)

        # Device-aware VMEM ceiling (respects v7x's 64 MiB/TC as well as
        # v5e/v6e's 128 MiB).
        self._cap_limit = max(_vmem_capacity_bytes() - _HEADROOM,
                              16 * 1024 * 1024)
        self.th = self._choose_th()          # hidden-chunk width (lane multiple)

    def _choose_th(self):
        """Largest hidden chunk whose weight slabs fit ~half the VMEM ceiling."""
        target = self._cap_limit // 2
        n_max = self.hid_pad // LANE
        for c in range(1, n_max + 1):
            if self.hid_pad % c:
                continue
            th = self.hid_pad // c
            if th % LANE:
                continue
            wbuf = 1 if c == 1 else 2
            wbytes = wbuf * (self.in_pad * th + th * self.out_pad) * self._wsize
            if wbytes <= target:
                return th
        return LANE                           # best effort: smallest chunk

    def _choose_tb(self, batch):
        n_hid = self.hid_pad // self.th
        tb = _MIN_TB
        for cand in _TB_CANDIDATES:
            if _vmem_budget(cand, self.in_pad, self.th, self.out_pad, n_hid,
                            self._wsize) <= self._cap_limit:
                tb = cand
                break
        # Give the "parallel" batch axis >= 2 steps when possible so both v7x
        # TensorCores get work (no effect on v5e/v6e correctness).
        while tb > _MIN_TB and _round_up(batch, tb) // tb < 2:
            tb //= 2
        return tb

    def __call__(self, a):
        tb = self._choose_tb(a.shape[0])
        n_hid = self.hid_pad // self.th
        budget = _vmem_budget(tb, self.in_pad, self.th, self.out_pad, n_hid,
                              self._wsize)
        vmem_limit = int(min(self._cap_limit,
                             max(budget, 32 * 1024 * 1024)))
        return _hashnet2_forward(a, self.w1t, self.b1_row, self.w2t,
                                 self.b2_row, tb=tb, th=self.th,
                                 out_size=self.output_size,
                                 vmem_limit=vmem_limit)


if __name__ == "__main__":
    # Small shapes consistent with a 2-layer fully connected HashNet.
    batch, input_size, hidden_size, output_size = 2, 16, 32, 8
    k1, k2 = 64, 32

    key = jax.random.PRNGKey(0)
    k_params, k_x = jax.random.split(key)

    model = HashNet2LayerPallas(input_size, hidden_size, output_size, k1, k2,
                                k_params)
    x = jax.random.normal(k_x, (batch, input_size), jnp.float32)

    out = model(x)
    out = jax.block_until_ready(out)
    assert out.shape == (batch, output_size)

    # Pure-JAX reference with the same bf16-rounded operands / f32 accumulation.
    x_pad = _pad_to(x, (batch, model.in_pad))
    xf = x_pad.astype(jnp.bfloat16).astype(jnp.float32)
    w1f = model.w1t.astype(jnp.float32)
    w2f = model.w2t.astype(jnp.float32)
    h = jnp.maximum(xf @ w1f + model.b1_row, 0.0)
    ref_full = h.astype(jnp.bfloat16).astype(jnp.float32) @ w2f + model.b2_row
    ref = ref_full[:batch, :output_size]

    assert jnp.allclose(out, ref, atol=1e-4, rtol=1e-2), (
        f"max abs err {jnp.max(jnp.abs(out - ref))}")

    print("KERNEL_OK")
</pallas_src>

<mosaic_0001>
module attributes {stable_mosaic.version = 11 : i64} {
  func.func @hashnet2_kernel(%arg0: i32, %arg1: i32, %arg2: memref<128x128xf32, #tpu.memory_space<vmem>>, %arg3: memref<128x128xbf16, #tpu.memory_space<vmem>>, %arg4: memref<1x128xf32, #tpu.memory_space<vmem>>, %arg5: memref<128x128xbf16, #tpu.memory_space<vmem>>, %arg6: memref<1x128xf32, #tpu.memory_space<vmem>>, %arg7: memref<128x128xf32, #tpu.memory_space<vmem>>, %arg8: memref<128x128xf32, #tpu.memory_space<vmem>>) attributes {dimension_semantics = [#tpu.dimension_semantics<parallel>, #tpu.dimension_semantics<arbitrary>], iteration_bounds = array<i64: 1, 1>, scalar_prefetch = 0 : i64, scratch_operands = 1 : i64, tpu.core_type = #tpu.core_type<tc>, window_params = [{transform_indices = @transform_0, window_bounds = array<i64: 128, 128>}, {pipeline_mode = #tpu.pipeline_mode<synchronous>, transform_indices = @transform_1, window_bounds = array<i64: 128, 128>}, {pipeline_mode = #tpu.pipeline_mode<synchronous>, transform_indices = @transform_2, window_bounds = array<i64: 1, 128>}, {pipeline_mode = #tpu.pipeline_mode<synchronous>, transform_indices = @transform_3, window_bounds = array<i64: 128, 128>}, {pipeline_mode = #tpu.pipeline_mode<synchronous>, transform_indices = @transform_4, window_bounds = array<i64: 1, 128>}, {transform_indices = @transform_5, window_bounds = array<i64: 128, 128>}]} {
    %c0_i32 = arith.constant 0 : i32
    %0 = arith.cmpi eq, %arg1, %c0_i32 : i32
    %1 = arith.extui %0 : i1 to i32
    %c0_i32_0 = arith.constant 0 : i32
    %2 = arith.cmpi ne, %1, %c0_i32_0 : i32
    scf.if %2 {
      %cst_16 = arith.constant 0.000000e+00 : f32
      %21 = vector.broadcast %cst_16 : f32 to vector<128x128xf32>
      %c0_17 = arith.constant 0 : index
      %c0_18 = arith.constant 0 : index
      %22 = vector.load %arg8[%c0_17, %c0_18] : memref<128x128xf32, #tpu.memory_space<vmem>>, vector<128x128xf32>
      tpu.vector_store %arg8[%c0_17, %c0_18], %21 {strides = array<i32>} : memref<128x128xf32, #tpu.memory_space<vmem>>, vector<128x128xf32>,
    } else {
    }
    %c0 = arith.constant 0 : index
    %c0_1 = arith.constant 0 : index
    %3 = vector.load %arg2[%c0, %c0_1] : memref<128x128xf32, #tpu.memory_space<vmem>>, vector<128x128xf32>
    %4 = arith.truncf %3 : vector<128x128xf32> to vector<128x128xbf16>
    %c0_2 = arith.constant 0 : index
    %c0_3 = arith.constant 0 : index
    %5 = vector.load %arg3[%c0_2, %c0_3] : memref<128x128xbf16, #tpu.memory_space<vmem>>, vector<128x128xbf16>
    %cst = arith.constant dense<0.000000e+00> : vector<128x128xf32>
    %6 = tpu.matmul %4, %5, %cst {dimension_numbers = #tpu.dot_dimension_numbers<[1], [0], [0], [1], [0, 0, 1, 1], [], []>} : vector<128x128xbf16>, vector<128x128xbf16>, vector<128x128xf32> -> vector<128x128xf32>
    %c0_4 = arith.constant 0 : index
    %c0_5 = arith.constant 0 : index
    %7 = vector.load %arg4[%c0_4, %c0_5] : memref<1x128xf32, #tpu.memory_space<vmem>>, vector<1x128xf32>
    %8 = vector.broadcast %7 : vector<1x128xf32> to vector<128x128xf32>
    %9 = arith.addf %6, %8 : vector<128x128xf32>
    %cst_6 = arith.constant 0.000000e+00 : f32
    %10 = vector.broadcast %cst_6 : f32 to vector<128x128xf32>
    %11 = arith.maximumf %9, %10 : vector<128x128xf32>
    %c0_7 = arith.constant 0 : index
    %c0_8 = arith.constant 0 : index
    %12 = vector.load %arg8[%c0_7, %c0_8] : memref<128x128xf32, #tpu.memory_space<vmem>>, vector<128x128xf32>
    %13 = arith.truncf %11 : vector<128x128xf32> to vector<128x128xbf16>
    %c0_9 = arith.constant 0 : index
    %c0_10 = arith.constant 0 : index
    %14 = vector.load %arg5[%c0_9, %c0_10] : memref<128x128xbf16, #tpu.memory_space<vmem>>, vector<128x128xbf16>
    %cst_11 = arith.constant dense<0.000000e+00> : vector<128x128xf32>
    %15 = tpu.matmul %13, %14, %cst_11 {dimension_numbers = #tpu.dot_dimension_numbers<[1], [0], [0], [1], [0, 0, 1, 1], [], []>} : vector<128x128xbf16>, vector<128x128xbf16>, vector<128x128xf32> -> vector<128x128xf32>
    %16 = arith.addf %12, %15 : vector<128x128xf32>
    %c0_12 = arith.constant 0 : index
    %c0_13 = arith.constant 0 : index
    %17 = vector.load %arg8[%c0_12, %c0_13] : memref<128x128xf32, #tpu.memory_space<vmem>>, vector<128x128xf32>
    tpu.vector_store %arg8[%c0_12, %c0_13], %16 {strides = array<i32>} : memref<128x128xf32, #tpu.memory_space<vmem>>, vector<128x128xf32>,
    %c0_i32_14 = arith.constant 0 : i32
    %18 = arith.cmpi eq, %arg1, %c0_i32_14 : i32
    %19 = arith.extui %18 : i1 to i32
    %c0_i32_15 = arith.constant 0 : i32
    %20 = arith.cmpi ne, %19, %c0_i32_15 : i32
    scf.if %20 {
      %c0_16 = arith.constant 0 : index
      %c0_17 = arith.constant 0 : index
      %21 = vector.load %arg8[%c0_16, %c0_17] : memref<128x128xf32, #tpu.memory_space<vmem>>, vector<128x128xf32>
      %c0_18 = arith.constant 0 : index
      %c0_19 = arith.constant 0 : index
      %22 = vector.load %arg6[%c0_18, %c0_19] : memref<1x128xf32, #tpu.memory_space<vmem>>, vector<1x128xf32>
      %23 = vector.broadcast %22 : vector<1x128xf32> to vector<128x128xf32>
      %24 = arith.addf %21, %23 : vector<128x128xf32>
      %c0_20 = arith.constant 0 : index
      %c0_21 = arith.constant 0 : index
      %25 = vector.load %arg7[%c0_20, %c0_21] : memref<128x128xf32, #tpu.memory_space<vmem>>, vector<128x128xf32>
      tpu.vector_store %arg7[%c0_20, %c0_21], %24 {strides = array<i32>} : memref<128x128xf32, #tpu.memory_space<vmem>>, vector<128x128xf32>,
    } else {
    }
    return
  }
  func.func @transform_0(%arg0: i32, %arg1: i32) -> (i32, i32) {
    %c0_i32 = arith.constant 0 : i32
    %c0_i32_0 = arith.constant 0 : i32
    return %arg0, %c0_i32 : i32, i32
  }
  func.func @transform_1(%arg0: i32, %arg1: i32) -> (i32, i32) {
    %c0_i32 = arith.constant 0 : i32
    %c0_i32_0 = arith.constant 0 : i32
    return %c0_i32, %arg1 : i32, i32
  }
  func.func @transform_2(%arg0: i32, %arg1: i32) -> (i32, i32) {
    %c0_i32 = arith.constant 0 : i32
    %c0_i32_0 = arith.constant 0 : i32
    return %c0_i32, %arg1 : i32, i32
  }
  func.func @transform_3(%arg0: i32, %arg1: i32) -> (i32, i32) {
    %c0_i32 = arith.constant 0 : i32
    %c0_i32_0 = arith.constant 0 : i32
    return %arg1, %c0_i32 : i32, i32
  }
  func.func @transform_4(%arg0: i32, %arg1: i32) -> (i32, i32) {
    %c0_i32 = arith.constant 0 : i32
    %c0_i32_0 = arith.constant 0 : i32
    %c0_i32_1 = arith.constant 0 : i32
    return %c0_i32, %c0_i32_0 : i32, i32
  }
  func.func @transform_5(%arg0: i32, %arg1: i32) -> (i32, i32) {
    %c0_i32 = arith.constant 0 : i32
    %c0_i32_0 = arith.constant 0 : i32
    return %arg0, %c0_i32 : i32, i32
  }
}

</mosaic_0001>

<bundles_post_ra>
// kernel: _hashnet2_forward.1
= control target key start
LH: loop header
LB: loop body
LE: loop exit
PB: predicated region body
PF: predicated region fallthrough
CT: control target
= control target key end

     0   :  { %s838_s1 = inlined_call_operand.vmem [shape: bf16[128,128], index: 1, kind: input, shape index: {}]   ;;  %s839_s0 = inlined_call_operand.vmem [shape: f32[128,128], index: 0, kind: input, shape index: {}]   ;;  %s840_s3 = inlined_call_operand.vmem [shape: bf16[128,128], index: 3, kind: input, shape index: {}]   ;;  %s841_s2 = inlined_call_operand.vmem [shape: f32[1,128], index: 2, kind: input, shape index: {}]   ;;  %s842_s4 = inlined_call_operand.vmem [shape: f32[1,128], index: 4, kind: input, shape index: {}]   ;;  %s843_s5 = inlined_call_operand.vmem [shape: f32[128,128], index: 5, kind: output, shape index: {}]  }
   0x1   :  { %v642_v0 = vld [vmem:[%s838_s1] sm:$0xff]   ;;  %v643_v1 = vld [vmem:[%s838_s1 + $0x8] sm:$0xff]   ;;  %v644_v2 = vld [vmem:[%s838_s1 + $0x10] sm:$0xff]  }
   0x2   :  { %578 = vmatprep.subr.bf16.mxu0 %v642_v0  ;;  %v645_v3 = vld [vmem:[%s838_s1 + $0x18] sm:$0xff]   ;;  %v41_v4 = vld [vmem:[%s839_s0] sm:$0xff]  ;;  %v42_v5 = vld [vmem:[%s839_s0 + $0x8] sm:$0xff] }
   0x3   :  { %579 = vmatpush3.bf16.msra.mxu0 %v642_v0  ;;  %v57_v6 = vpack.c.bf16 %v42_v5, %v41_v4  ;;  %v646_v7 = vld [vmem:[%s838_s1 + $0x20] sm:$0xff]   ;;  %v651_v9 = vld [vmem:[%s840_s3 + $0x8] sm:$0xff]   ;;  %v652_v11 = vld [vmem:[%s840_s3 + $0x10] sm:$0xff]  }
   0x4   :  { %580 = vmatprep.subr.bf16.mxu0 %v643_v1  ;;  %v650_v8 = vld [vmem:[%s840_s3] sm:$0xff]   ;;  %v647_v10 = vld [vmem:[%s838_s1 + $0x28] sm:$0xff]   ;;  %v648_v12 = vld [vmem:[%s838_s1 + $0x30] sm:$0xff]  }
   0x5   :  { %594 = vmatprep.mubr.bf16.mxu0 %v57_v6  ;;  %610 = vmatprep.subr.bf16.mxu1 %v650_v8  ;;  %v653_v13 = vld [vmem:[%s840_s3 + $0x18] sm:$0xff]   ;;  %v654_v15 = vld [vmem:[%s840_s3 + $0x20] sm:$0xff]   ;;  %v43_v16 = vld [vmem:[%s839_s0 + $0x10] sm:$0xff] }
   0x6   :  { %611 = vmatpush3.bf16.msra.mxu1 %v650_v8  ;;  %v649_v14 = vld [vmem:[%s838_s1 + $0x38] sm:$0xff]   ;;  %v45_v18 = vld [vmem:[%s839_s0 + $0x20] sm:$0xff]  ;;  %v46_v19 = vld [vmem:[%s839_s0 + $0x28] sm:$0xff] }
   0x7   :  { %581 = vmatpush3.bf16.msra.mxu0 %v643_v1  ;;  %612 = vmatprep.subr.bf16.mxu1 %v651_v9  ;;  %v44_v17 = vld [vmem:[%s839_s0 + $0x18] sm:$0xff]  ;;  %v655_v21 = vld [vmem:[%s840_s3 + $0x28] sm:$0xff]   ;;  %v59_v22 = vpack.c.bf16 %v46_v19, %v45_v18  ;;  %v47_v23 = vld [vmem:[%s839_s0 + $0x30] sm:$0xff] }
   0x8   :  { %582 = vmatprep.subr.bf16.mxu0 %v644_v2  ;;  %v58_v20 = vpack.c.bf16 %v44_v17, %v43_v16  ;;  %v48_v24 = vld [vmem:[%s839_s0 + $0x38] sm:$0xff]  ;;  %v49_v25 = vld [vmem:[%s839_s0 + $0x40] sm:$0xff]  ;;  %v50_v26 = vld [vmem:[%s839_s0 + $0x48] sm:$0xff] }
   0x9   :  { %v60_v27 = vpack.c.bf16 %v48_v24, %v47_v23  ;;  %v61_v28 = vpack.c.bf16 %v50_v26, %v49_v25  ;;  %v51_v29 = vld [vmem:[%s839_s0 + $0x50] sm:$0xff]  ;;  %v52_v30 = vld [vmem:[%s839_s0 + $0x58] sm:$0xff]  ;;  %v53_v31 = vld [vmem:[%s839_s0 + $0x60] sm:$0xff] }
   0xa   :  { %613 = vmatpush3.bf16.msra.mxu1 %v651_v9  ;;  %v54_v32 = vld [vmem:[%s839_s0 + $0x68] sm:$0xff]  ;;  %v62_v33 = vpack.c.bf16 %v52_v30, %v51_v29  ;;  %v55_v35 = vld [vmem:[%s839_s0 + $0x70] sm:$0xff]  ;;  %v56_v36 = vld [vmem:[%s839_s0 + $0x78] sm:$0xff] }
   0xb   :  { %583 = vmatpush3.bf16.msra.mxu0 %v644_v2  ;;  %614 = vmatprep.subr.bf16.mxu1 %v652_v11  ;;  %v63_v34 = vpack.c.bf16 %v54_v32, %v53_v31  ;;  %v64_v37 = vpack.c.bf16 %v56_v36, %v55_v35  ;;  %v656_v38 = vld [vmem:[%s840_s3 + $0x30] sm:$0xff]   ;;  %v657_v39 = vld [vmem:[%s840_s3 + $0x38] sm:$0xff]   ;;  %v528_v40 = vld [vmem:[%s841_s2] ss:$0 sm:$0xff] }
   0xc   :  { %584 = vmatprep.subr.bf16.mxu0 %v645_v3 }
   0xe   :  { %615 = vmatpush3.bf16.msra.mxu1 %v652_v11 }
   0xf   :  { %585 = vmatpush3.bf16.msra.mxu0 %v645_v3  ;;  %616 = vmatprep.subr.bf16.mxu1 %v653_v13 }
  0x10   :  { %586 = vmatprep.subr.bf16.mxu0 %v646_v7 }
  0x12   :  { %617 = vmatpush3.bf16.msra.mxu1 %v653_v13 }
  0x13   :  { %587 = vmatpush3.bf16.msra.mxu0 %v646_v7  ;;  %618 = vmatprep.subr.bf16.mxu1 %v654_v15 }
  0x14   :  { %588 = vmatprep.subr.bf16.mxu0 %v647_v10 }
  0x16   :  { %619 = vmatpush3.bf16.msra.mxu1 %v654_v15 }
  0x17   :  { %589 = vmatpush3.bf16.msra.mxu0 %v647_v10  ;;  %620 = vmatprep.subr.bf16.mxu1 %v655_v21 }
  0x18   :  { %590 = vmatprep.subr.bf16.mxu0 %v648_v12 }
  0x1a   :  { %621 = vmatpush3.bf16.msra.mxu1 %v655_v21 }
  0x1b   :  { %591 = vmatpush3.bf16.msra.mxu0 %v648_v12  ;;  %622 = vmatprep.subr.bf16.mxu1 %v656_v38 }
  0x1c   :  { %592 = vmatprep.subr.bf16.mxu0 %v649_v14 }
  0x1e   :  { %623 = vmatpush3.bf16.msra.mxu1 %v656_v38 }
  0x1f   :  { %593 = vmatpush3.bf16.msra.mxu0 %v649_v14  ;;  %624 = vmatprep.subr.bf16.mxu1 %v657_v39 }
  0x22   :  { %595 = vmatmul.mubr.bf16.vlgmr.msra.gmra.mrb[0].mxu0 %v58_v20  ;;  %625 = vmatpush3.bf16.msra.mxu1 %v657_v39 }
  0x23   :  { %598 = vmatprep.mubr.bf16.mxu0 %v59_v22 }
  0x2a   :  { %599 = vmatmul.mubr.bf16.gmra.mrb[4].mxu0 %v60_v27 }
  0x2b   :  { %602 = vmatprep.mubr.bf16.mxu0 %v61_v28 }
  0x32   :  { %603 = vmatmul.mubr.bf16.gmra.mrb[8].mxu0 %v62_v33  ;;  %v545_v33 = vld [vmem:[%s842_s4] ss:$0 sm:$0xff] }
  0x33   :  { %606 = vmatprep.mubr.bf16.mxu0 %v63_v34 }
  0x3a   :  { %607 = vmatmul.mubr.bf16.gmra.mrb[12].mxu0 %v64_v37 }
  0xf5   :  { %v596_v41 = vpop.f32.mrb[0].mxu0 }
  0xf6   :  { %v179_v42 = vadd.f32 %v596_v41, %v528_v40  ;;  %v170_v43 = vpop.f32.mrb[1].mxu0 }
  0xf7   :  { %v171_v44 = vadd.f32 %v528_v40, %v170_v43  ;;  %v597_v45 = vpop.f32.mrb[2].mxu0 }
  0xf8   :  { %v182_v46 = vadd.f32 %v597_v45, %v528_v40  ;;  %v173_v47 = vpop.f32.mrb[3].mxu0  ;;  %v235_v49 = vmax.f32 %v179_v42, 0.0 }
  0xf9   :  { %v174_v48 = vadd.f32 %v528_v40, %v173_v47  ;;  %v233_v51 = vmax.f32 %v171_v44, 0.0 }
  0xfa   :  { %v236_v50 = vmax.f32 %v182_v46, 0.0 }
  0xfb   :  { %v234_v52 = vmax.f32 %v174_v48, 0.0 }
  0xfc   :  { %v266_v53 = vpack.c.bf16 %v236_v50, %v235_v49 }
  0xfd   :  { %v600_v54 = vpop.f32.mrb[4].mxu0  ;;  %v265_v55 = vpack.c.bf16 %v234_v52, %v233_v51 }
  0xfe   :  { %v195_v56 = vadd.f32 %v600_v54, %v528_v40  ;;  %v186_v57 = vpop.f32.mrb[5].mxu0 }
  0xff   :  { %v187_v58 = vadd.f32 %v528_v40, %v186_v57  ;;  %v601_v59 = vpop.f32.mrb[6].mxu0  ;;  %626 = vmatprep.mubr.bf16.mxu1 %v265_v55 }
 0x100   :  { %v198_v60 = vadd.f32 %v601_v59, %v528_v40  ;;  %v189_v61 = vpop.f32.mrb[7].mxu0  ;;  %627 = vmatmul.mubr.bf16.vlgmr.msra.gmra.mrb[0].mxu1 %v266_v53  ;;  %v239_v63 = vmax.f32 %v195_v56, 0.0 }
 0x101   :  { %v190_v62 = vadd.f32 %v528_v40, %v189_v61  ;;  %v237_v1 = vmax.f32 %v187_v58, 0.0 }
 0x102   :  { %v240_v0 = vmax.f32 %v198_v60, 0.0 }
 0x103   :  { %v238_v2 = vmax.f32 %v190_v62, 0.0 }
 0x104   :  { %v268_v3 = vpack.c.bf16 %v240_v0, %v239_v63 }
 0x105   :  { %v267_v4 = vpack.c.bf16 %v238_v2, %v237_v1  ;;  %v604_v5 = vpop.f32.mrb[8].mxu0 }
 0x106   :  { %v211_v6 = vadd.f32 %v604_v5, %v528_v40  ;;  %v202_v7 = vpop.f32.mrb[9].mxu0 }
 0x107   :  { %v203_v8 = vadd.f32 %v528_v40, %v202_v7  ;;  %v605_v9 = vpop.f32.mrb[10].mxu0  ;;  %630 = vmatprep.mubr.bf16.mxu1 %v267_v4 }
 0x108   :  { %v214_v10 = vadd.f32 %v605_v9, %v528_v40  ;;  %v205_v11 = vpop.f32.mrb[11].mxu0  ;;  %631 = vmatmul.mubr.bf16.gmra.mrb[4].mxu1 %v268_v3  ;;  %v243_v13 = vmax.f32 %v211_v6, 0.0 }
 0x109   :  { %v206_v12 = vadd.f32 %v528_v40, %v205_v11  ;;  %v241_v15 = vmax.f32 %v203_v8, 0.0 }
 0x10a   :  { %v244_v14 = vmax.f32 %v214_v10, 0.0 }
 0x10b   :  { %v242_v16 = vmax.f32 %v206_v12, 0.0 }
 0x10c   :  { %v270_v17 = vpack.c.bf16 %v244_v14, %v243_v13 }
 0x10d   :  { %v269_v18 = vpack.c.bf16 %v242_v16, %v241_v15  ;;  %v608_v19 = vpop.f32.mrb[12].mxu0 }
 0x10e   :  { %v227_v20 = vadd.f32 %v608_v19, %v528_v40  ;;  %v218_v21 = vpop.f32.mrb[13].mxu0 }
 0x10f   :  { %v219_v22 = vadd.f32 %v528_v40, %v218_v21  ;;  %v609_v23 = vpop.f32.mrb[14].mxu0  ;;  %634 = vmatprep.mubr.bf16.mxu1 %v269_v18 }
 0x110   :  { %v230_v24 = vadd.f32 %v609_v23, %v528_v40  ;;  %v221_v25 = vpop.f32.mrb[15].mxu0  ;;  %635 = vmatmul.mubr.bf16.gmra.mrb[8].mxu1 %v270_v17  ;;  %v247_v27 = vmax.f32 %v227_v20, 0.0 }
 0x111   :  { %v222_v26 = vadd.f32 %v528_v40, %v221_v25  ;;  %v245_v29 = vmax.f32 %v219_v22, 0.0 }
 0x112   :  { %v248_v28 = vmax.f32 %v230_v24, 0.0 }
 0x113   :  { %v246_v30 = vmax.f32 %v222_v26, 0.0 }
 0x114   :  { %v272_v31 = vpack.c.bf16 %v248_v28, %v247_v27 }
 0x115   :  { %v271_v32 = vpack.c.bf16 %v246_v30, %v245_v29 }
 0x117   :  { %638 = vmatprep.mubr.bf16.mxu1 %v271_v32 }
 0x118   :  { %639 = vmatmul.mubr.bf16.gmra.mrb[12].mxu1 %v272_v31 }
 0x1d3   :  { %v628_v34 = vpop.f32.mrb[0].mxu1 }
 0x1d4   :  { %v494_v35 = vadd.f32 %v628_v34, %v545_v33  ;;  %v371_v36 = vpop.f32.mrb[1].mxu1 }
 0x1d5   :  { %v492_v37 = vadd.f32 %v545_v33, %v371_v36  ;;  %v629_v38 = vpop.f32.mrb[2].mxu1 }
 0x1d6   :  { %510 = vst [vmem:[%s843_s5 + $0x10] sm:$0xff] %v494_v35  ;;  %v495_v39 = vadd.f32 %v629_v38, %v545_v33  ;;  %v374_v40 = vpop.f32.mrb[3].mxu1 }
 0x1d7   :  { %508 = vst [vmem:[%s843_s5] sm:$0xff] %v492_v37  ;;  %v493_v41 = vadd.f32 %v545_v33, %v374_v40 }
 0x1d8   :  { %511 = vst [vmem:[%s843_s5 + $0x18] sm:$0xff] %v495_v39 }
 0x1d9   :  { %509 = vst [vmem:[%s843_s5 + $0x8] sm:$0xff] %v493_v41 }
 0x1db   :  { %v632_v42 = vpop.f32.mrb[4].mxu1 }
 0x1dc   :  { %v498_v43 = vadd.f32 %v632_v42, %v545_v33  ;;  %v387_v44 = vpop.f32.mrb[5].mxu1 }
 0x1dd   :  { %v496_v45 = vadd.f32 %v545_v33, %v387_v44  ;;  %v633_v46 = vpop.f32.mrb[6].mxu1 }
 0x1de   :  { %514 = vst [vmem:[%s843_s5 + $0x30] sm:$0xff] %v498_v43  ;;  %v499_v47 = vadd.f32 %v633_v46, %v545_v33  ;;  %v390_v48 = vpop.f32.mrb[7].mxu1 }
 0x1df   :  { %512 = vst [vmem:[%s843_s5 + $0x20] sm:$0xff] %v496_v45  ;;  %v497_v49 = vadd.f32 %v545_v33, %v390_v48 }
 0x1e0   :  { %515 = vst [vmem:[%s843_s5 + $0x38] sm:$0xff] %v499_v47 }
 0x1e1   :  { %513 = vst [vmem:[%s843_s5 + $0x28] sm:$0xff] %v497_v49 }
 0x1e3   :  { %v636_v50 = vpop.f32.mrb[8].mxu1 }
 0x1e4   :  { %v502_v51 = vadd.f32 %v636_v50, %v545_v33  ;;  %v403_v52 = vpop.f32.mrb[9].mxu1 }
 0x1e5   :  { %v500_v53 = vadd.f32 %v545_v33, %v403_v52  ;;  %v637_v54 = vpop.f32.mrb[10].mxu1 }
 0x1e6   :  { %518 = vst [vmem:[%s843_s5 + $0x50] sm:$0xff] %v502_v51  ;;  %v503_v55 = vadd.f32 %v637_v54, %v545_v33  ;;  %v406_v56 = vpop.f32.mrb[11].mxu1 }
 0x1e7   :  { %516 = vst [vmem:[%s843_s5 + $0x40] sm:$0xff] %v500_v53  ;;  %v501_v57 = vadd.f32 %v545_v33, %v406_v56 }
 0x1e8   :  { %519 = vst [vmem:[%s843_s5 + $0x58] sm:$0xff] %v503_v55 }
 0x1e9   :  { %517 = vst [vmem:[%s843_s5 + $0x48] sm:$0xff] %v501_v57 }
 0x1eb   :  { %v640_v58 = vpop.f32.mrb[12].mxu1 }
 0x1ec   :  { %v506_v59 = vadd.f32 %v640_v58, %v545_v33  ;;  %v419_v60 = vpop.f32.mrb[13].mxu1 }
 0x1ed   :  { %v504_v61 = vadd.f32 %v545_v33, %v419_v60  ;;  %v641_v62 = vpop.f32.mrb[14].mxu1 }
 0x1ee   :  { %522 = vst [vmem:[%s843_s5 + $0x70] sm:$0xff] %v506_v59  ;;  %v507_v63 = vadd.f32 %v641_v62, %v545_v33  ;;  %v422_v0 = vpop.f32.mrb[15].mxu1 }
 0x1ef   :  { %520 = vst [vmem:[%s843_s5 + $0x60] sm:$0xff] %v504_v61  ;;  %v505_v1 = vadd.f32 %v545_v33, %v422_v0 }
 0x1f0   :  { %523 = vst [vmem:[%s843_s5 + $0x78] sm:$0xff] %v507_v63 }
 0x1f1   :  { %521 = vst [vmem:[%s843_s5 + $0x68] sm:$0xff] %v505_v1 }

</bundles_post_ra>
